<compile_context>
chip_gen: v7x
topology: tpu7x:2x2x1
jax: 0.10.0
libtpu: 0.0.40
codegen_flags: <defaults>
</compile_context>

<pallas_src>
import functools

import jax
import jax.numpy as jnp
from jax.experimental import pallas as pl
from jax.experimental.pallas import tpu as pltpu


# ------------------------------ small helpers -------------------------------

def _round_up(x, m):
    return (x + m - 1) // m * m


_VMEM_LIMIT_BYTES = 48 * 1024 * 1024


def _compiler_params(n_axes):
    return pltpu.CompilerParams(
        dimension_semantics=("parallel",) * n_axes,
        vmem_limit_bytes=_VMEM_LIMIT_BYTES)


# ------------------------------ Pallas kernels ------------------------------

def _bn_relu_kernel(x_ref, s_ref, b_ref, o_ref):
    # y = relu(x * scale + bias), channel-broadcast; store in compute dtype.
    y = jnp.maximum(x_ref[...] * s_ref[...] + b_ref[...], 0.0)
    o_ref[...] = y.astype(o_ref.dtype)


def _matmul_bn_relu_kernel(p_ref, w_ref, s_ref, b_ref, o_ref):
    # conv-as-matmul (im2col patches) -> folded BN scale/bias -> ReLU.
    acc = jnp.dot(p_ref[...], w_ref[...], preferred_element_type=jnp.float32)
    z = jnp.maximum(acc * s_ref[...] + b_ref[...], 0.0)
    o_ref[...] = z.astype(o_ref.dtype)


def _make_conv2_ds_kernel(tap_offsets, l2, cout_p):
    """Per-image fused kernel: 3x3 conv on z + bn1/relu + 1x1 downsample + add."""
    def kernel(zf_ref, xd_ref, w2_ref, wds_ref, s1_ref, b1_ref, o_ref):
        # Downsample path: bn1 + relu fused on the strided input, 1x1 conv as a dot
        # accumulated straight into the output accumulator (residual add is free).
        xd = jnp.maximum(xd_ref[0] * s1_ref[...] + b1_ref[...], 0.0)
        acc = jnp.dot(xd.astype(wds_ref.dtype), wds_ref[...],
                      preferred_element_type=jnp.float32)
        # 3x3 stride-1 conv: 9 accumulated dots over row-shifted slabs of the
        # spatially padded, row-flattened z tile (im2col lives only in VMEM reads).
        for t, off in enumerate(tap_offsets):
            slab = zf_ref[0, pl.ds(off, l2), :]
            wt = w2_ref[pl.ds(t * cout_p, cout_p), :]
            acc = acc + jnp.dot(slab, wt, preferred_element_type=jnp.float32)
        o_ref[0] = acc.astype(o_ref.dtype)
    return kernel


# ------------------------------ kernel wrappers ------------------------------

def _bn_relu(x2d, scale, bias, out_dtype, tile_m):
    m, c = x2d.shape
    mp = _round_up(m, tile_m)
    x2d = jnp.pad(x2d, ((0, mp - m), (0, 0)))
    out = pl.pallas_call(
        _bn_relu_kernel,
        out_shape=jax.ShapeDtypeStruct((mp, c), out_dtype),
        grid=(mp // tile_m,),
        in_specs=[
            pl.BlockSpec((tile_m, c), lambda i: (i, 0)),
            pl.BlockSpec((1, c), lambda i: (0, 0)),
            pl.BlockSpec((1, c), lambda i: (0, 0)),
        ],
        out_specs=pl.BlockSpec((tile_m, c), lambda i: (i, 0)),
        compiler_params=_compiler_params(1),
    )(x2d, scale, bias)
    return out[:m]


def _conv_matmul_bn_relu(patches, w, scale, bias, out_dtype, tile_m):
    m, k = patches.shape
    _, n = w.shape
    mp = _round_up(m, tile_m)
    patches = jnp.pad(patches, ((0, mp - m), (0, 0)))
    out = pl.pallas_call(
        _matmul_bn_relu_kernel,
        out_shape=jax.ShapeDtypeStruct((mp, n), out_dtype),
        grid=(mp // tile_m,),
        in_specs=[
            pl.BlockSpec((tile_m, k), lambda i: (i, 0)),
            pl.BlockSpec((k, n), lambda i: (0, 0)),      # resident weight
            pl.BlockSpec((1, n), lambda i: (0, 0)),      # resident scale
            pl.BlockSpec((1, n), lambda i: (0, 0)),      # resident bias
        ],
        out_specs=pl.BlockSpec((tile_m, n), lambda i: (i, 0)),
        compiler_params=_compiler_params(1),
    )(patches, w, scale, bias)
    return out[:m]


def _conv2_plus_downsample(zf, xds, w2, wds, s1, b1, tap_offsets, l2):
    n, rp2, cout_p = zf.shape
    _, _, cin_p = xds.shape
    kern = _make_conv2_ds_kernel(tap_offsets, l2, cout_p)
    return pl.pallas_call(
        kern,
        out_shape=jax.ShapeDtypeStruct((n, l2, cout_p), jnp.float32),
        grid=(n,),
        in_specs=[
            pl.BlockSpec((1, rp2, cout_p), lambda i: (i, 0, 0)),
            pl.BlockSpec((1, l2, cin_p), lambda i: (i, 0, 0)),
            pl.BlockSpec((9 * cout_p, cout_p), lambda i: (0, 0)),  # resident
            pl.BlockSpec((cin_p, cout_p), lambda i: (0, 0)),       # resident
            pl.BlockSpec((1, cin_p), lambda i: (0, 0)),
            pl.BlockSpec((1, cin_p), lambda i: (0, 0)),
        ],
        out_specs=pl.BlockSpec((1, l2, cout_p), lambda i: (i, 0, 0)),
        compiler_params=_compiler_params(1),
    )(zf, xds, w2, wds, s1, b1)


# -------------------------------- parameters --------------------------------

def init_params(key, cin, cout):
    ks = jax.random.split(key, 11)
    u = lambda k, s, lo, hi: jax.random.uniform(k, s, jnp.float32, lo, hi)
    nrm = lambda k, s, sc: sc * jax.random.normal(k, s, jnp.float32)
    return dict(
        bn1_gamma=u(ks[0], (cin,), 0.5, 1.5),
        bn1_beta=nrm(ks[1], (cin,), 0.1),
        bn1_mean=nrm(ks[2], (cin,), 0.1),
        bn1_var=u(ks[3], (cin,), 0.5, 1.5),
        conv1_w=nrm(ks[4], (cout, cin, 3, 3), 0.2),      # PyTorch OIHW
        bn2_gamma=u(ks[5], (cout,), 0.5, 1.5),
        bn2_beta=nrm(ks[6], (cout,), 0.1),
        bn2_mean=nrm(ks[7], (cout,), 0.1),
        bn2_var=u(ks[8], (cout,), 0.5, 1.5),
        conv2_w=nrm(ks[9], (cout, cout, 3, 3), 0.2),
        ds_w=nrm(ks[10], (cout, cin, 1, 1), 0.2),
    )


# --------------------------------- forward ----------------------------------

def downsample_unit_forward(x_nchw, params, stride, compute_dtype=jnp.float32):
    eps = 1e-5
    n, cin, h, w = x_nchw.shape
    cout = params["conv1_w"].shape[0]
    ho = (h + 2 - 3) // stride + 1
    wo = (w + 2 - 3) // stride + 1

    lane_mult = 16 if compute_dtype == jnp.bfloat16 else 8
    cin_p = _round_up(cin, lane_mult)
    cout_p = _round_up(cout, 128)   # lane-dense stores + MXU-friendly output dim

    # Fold BatchNorm (running stats) into per-channel scale/bias; zero-pad so
    # padded channels stay exactly zero through relu and the convs.
    def fold(gamma, beta, mean, var, cp):
        s = gamma / jnp.sqrt(var + eps)
        b = beta - mean * s
        s = jnp.pad(s, (0, cp - s.shape[0])).reshape(1, cp).astype(jnp.float32)
        b = jnp.pad(b, (0, cp - b.shape[0])).reshape(1, cp).astype(jnp.float32)
        return s, b

    s1, b1 = fold(params["bn1_gamma"], params["bn1_beta"],
                  params["bn1_mean"], params["bn1_var"], cin_p)
    s2, b2 = fold(params["bn2_gamma"], params["bn2_beta"],
                  params["bn2_mean"], params["bn2_var"], cout_p)

    # Weights: OIHW -> (kh, kw, ci, co), zero-pad channels, flatten for matmul.
    w1 = jnp.transpose(params["conv1_w"], (2, 3, 1, 0))
    w1 = jnp.pad(w1, ((0, 0), (0, 0), (0, cin_p - cin), (0, cout_p - cout)))
    w1 = w1.reshape(9 * cin_p, cout_p).astype(compute_dtype)

    w2 = jnp.transpose(params["conv2_w"], (2, 3, 1, 0))
    w2 = jnp.pad(w2, ((0, 0), (0, 0), (0, cout_p - cout), (0, cout_p - cout)))
    w2 = w2.reshape(9 * cout_p, cout_p).astype(compute_dtype)

    wds = params["ds_w"][:, :, 0, 0].T
    wds = jnp.pad(wds, ((0, cin_p - cin), (0, cout_p - cout))).astype(compute_dtype)

    # Activations: NCHW -> NHWC, zero-pad channels.
    x = jnp.transpose(x_nchw, (0, 2, 3, 1)).astype(jnp.float32)
    x = jnp.pad(x, ((0, 0), (0, 0), (0, 0), (0, cin_p - cin)))

    # Kernel 1: y = relu(bn1(x))  -- tiled over N*H*W rows.
    m1 = n * h * w
    tile1 = 256 if m1 >= 256 else _round_up(m1, 16)
    y2d = _bn_relu(x.reshape(m1, cin_p), s1, b1, compute_dtype, tile1)
    y = y2d.reshape(n, h, w, cin_p)

    # Glue: im2col for the strided 3x3 conv (patch ordering (kh, kw, c)).
    y_pad = jnp.pad(y, ((0, 0), (1, 1), (1, 1), (0, 0)))
    cols = []
    for kh in range(3):
        for kw in range(3):
            cols.append(y_pad[:, kh:kh + stride * (ho - 1) + 1:stride,
                              kw:kw + stride * (wo - 1) + 1:stride, :])
    patches1 = jnp.concatenate(cols, axis=-1).reshape(n * ho * wo, 9 * cin_p)

    # Kernel 2: z = relu(bn2(conv1(y)))  -- tiled matmul with fused epilogue.
    m2 = n * ho * wo
    tile2 = 256 if m2 >= 256 else _round_up(m2, 16)
    z2d = _conv_matmul_bn_relu(patches1, w1, s2, b2, compute_dtype, tile2)
    z = z2d.reshape(n, ho, wo, cout_p)

    # Glue: spatially pad z once and flatten rows; kernel 3 then reads nine
    # row-shifted slabs of this buffer (no 9x HBM patch tensor).
    zf = jnp.pad(z, ((0, 0), (1, 2), (1, 1), (0, 0)))
    rp2 = (ho + 3) * (wo + 2)
    zf = zf.reshape(n, rp2, cout_p)
    l2 = ho * (wo + 2)
    tap_offsets = tuple(kh * (wo + 2) + kw for kh in range(3) for kw in range(3))

    # Downsample operand: strided subsample of x in the same (junk-padded) row
    # layout as kernel 3's accumulator; bn1+relu applied inside kernel 3.
    xds = x[:, ::stride, ::stride, :]
    xds = jnp.pad(xds, ((0, 0), (0, 0), (0, 2), (0, 0))).reshape(n, l2, cin_p)

    # Kernel 3: out = conv2(z) + conv1x1(relu(bn1(x_strided)))
    outj = _conv2_plus_downsample(zf, xds, w2, wds, s1, b1, tap_offsets, l2)

    out = outj.reshape(n, ho, wo + 2, cout_p)[:, :, :wo, :cout]
    return jnp.transpose(out, (0, 3, 1, 2))  # back to NCHW


# ---------------------------- pure-JAX reference -----------------------------

def reference_forward(x, params, stride):
    eps = 1e-5
    s1 = params["bn1_gamma"] / jnp.sqrt(params["bn1_var"] + eps)
    b1 = params["bn1_beta"] - params["bn1_mean"] * s1
    s2 = params["bn2_gamma"] / jnp.sqrt(params["bn2_var"] + eps)
    b2 = params["bn2_beta"] - params["bn2_mean"] * s2
    conv = functools.partial(jax.lax.conv_general_dilated,
                             dimension_numbers=("NCHW", "OIHW", "NCHW"),
                             precision=jax.lax.Precision.HIGHEST)
    y = jnp.maximum(x * s1[None, :, None, None] + b1[None, :, None, None], 0.0)
    z = conv(y, params["conv1_w"], (stride, stride), ((1, 1), (1, 1)))
    z = jnp.maximum(z * s2[None, :, None, None] + b2[None, :, None, None], 0.0)
    out = conv(z, params["conv2_w"], (1, 1), ((1, 1), (1, 1)))
    ds = conv(y, params["ds_w"], (stride, stride), ((0, 0), (0, 0)))
    return out + ds


# ----------------------------------- main ------------------------------------

if __name__ == "__main__":
    key = jax.random.PRNGKey(0)
    k_x, k_p = jax.random.split(key)

    N, C_IN, H, W = 2, 4, 16, 16
    C_OUT, STRIDE = 8, 2   # dropout is identity in eval mode

    x = jax.random.normal(k_x, (N, C_IN, H, W), jnp.float32)
    params = init_params(k_p, C_IN, C_OUT)

    ref = jax.block_until_ready(reference_forward(x, params, STRIDE))

    # f32 path.
    out_f32 = jax.block_until_ready(
        downsample_unit_forward(x, params, STRIDE, compute_dtype=jnp.float32))
    assert out_f32.shape == ref.shape == (N, C_OUT, H // STRIDE, W // STRIDE)
    assert jnp.allclose(out_f32, ref, rtol=1e-2, atol=1e-2)

    # bf16 matmul operands with f32 accumulation (recommended on v6e/v7x);
    # compared against the f32 reference with a bf16-appropriate tolerance.
    out_bf16 = jax.block_until_ready(
        downsample_unit_forward(x, params, STRIDE, compute_dtype=jnp.bfloat16))
    assert out_bf16.shape == ref.shape
    assert jnp.allclose(out_bf16, ref, rtol=5e-2, atol=1e-1)

    print("KERNEL_OK")
</pallas_src>

<mosaic_0001>
module attributes {stable_mosaic.version = 11 : i64} {
  func.func @_bn_relu_kernel(%arg0: i32, %arg1: memref<256x8xf32, #tpu.memory_space<vmem>>, %arg2: memref<1x8xf32, #tpu.memory_space<vmem>>, %arg3: memref<1x8xf32, #tpu.memory_space<vmem>>, %arg4: memref<256x8xf32, #tpu.memory_space<vmem>>) attributes {dimension_semantics = [#tpu.dimension_semantics<parallel>], iteration_bounds = array<i64: 2>, scalar_prefetch = 0 : i64, scratch_operands = 0 : i64, tpu.core_type = #tpu.core_type<tc>, window_params = [{transform_indices = @transform_0, window_bounds = array<i64: 256, 8>}, {pipeline_mode = #tpu.pipeline_mode<synchronous>, transform_indices = @transform_1, window_bounds = array<i64: 1, 8>}, {pipeline_mode = #tpu.pipeline_mode<synchronous>, transform_indices = @transform_2, window_bounds = array<i64: 1, 8>}, {transform_indices = @transform_3, window_bounds = array<i64: 256, 8>}]} {
    %c0 = arith.constant 0 : index
    %c0_0 = arith.constant 0 : index
    %0 = vector.load %arg1[%c0, %c0_0] : memref<256x8xf32, #tpu.memory_space<vmem>>, vector<256x8xf32>
    %c0_1 = arith.constant 0 : index
    %c0_2 = arith.constant 0 : index
    %1 = vector.load %arg2[%c0_1, %c0_2] : memref<1x8xf32, #tpu.memory_space<vmem>>, vector<1x8xf32>
    %2 = vector.broadcast %1 : vector<1x8xf32> to vector<256x8xf32>
    %3 = arith.mulf %0, %2 : vector<256x8xf32>
    %c0_3 = arith.constant 0 : index
    %c0_4 = arith.constant 0 : index
    %4 = vector.load %arg3[%c0_3, %c0_4] : memref<1x8xf32, #tpu.memory_space<vmem>>, vector<1x8xf32>
    %5 = vector.broadcast %4 : vector<1x8xf32> to vector<256x8xf32>
    %6 = arith.addf %3, %5 : vector<256x8xf32>
    %cst = arith.constant 0.000000e+00 : f32
    %7 = vector.broadcast %cst : f32 to vector<256x8xf32>
    %8 = arith.maximumf %6, %7 : vector<256x8xf32>
    %c0_5 = arith.constant 0 : index
    %c0_6 = arith.constant 0 : index
    %9 = vector.load %arg4[%c0_5, %c0_6] : memref<256x8xf32, #tpu.memory_space<vmem>>, vector<256x8xf32>
    tpu.vector_store %arg4[%c0_5, %c0_6], %8 {strides = array<i32>} : memref<256x8xf32, #tpu.memory_space<vmem>>, vector<256x8xf32>,
    return
  }
  func.func @transform_0(%arg0: i32) -> (i32, i32) {
    %c0_i32 = arith.constant 0 : i32
    %c0_i32_0 = arith.constant 0 : i32
    return %arg0, %c0_i32 : i32, i32
  }
  func.func @transform_1(%arg0: i32) -> (i32, i32) {
    %c0_i32 = arith.constant 0 : i32
    %c0_i32_0 = arith.constant 0 : i32
    %c0_i32_1 = arith.constant 0 : i32
    return %c0_i32, %c0_i32_0 : i32, i32
  }
  func.func @transform_2(%arg0: i32) -> (i32, i32) {
    %c0_i32 = arith.constant 0 : i32
    %c0_i32_0 = arith.constant 0 : i32
    %c0_i32_1 = arith.constant 0 : i32
    return %c0_i32, %c0_i32_0 : i32, i32
  }
  func.func @transform_3(%arg0: i32) -> (i32, i32) {
    %c0_i32 = arith.constant 0 : i32
    %c0_i32_0 = arith.constant 0 : i32
    return %arg0, %c0_i32 : i32, i32
  }
}

</mosaic_0001>

<bundles_post_ra>
// kernel: tpu_custom_call.1
= control target key start
LH: loop header
LB: loop body
LE: loop exit
PB: predicated region body
PF: predicated region fallthrough
CT: control target
= control target key end

     0   :  { %s454_s12 = smov 0   ;;  %s645_s0 = inlined_call_operand.vmem [shape: f32[512,8], index: 0, kind: input, shape index: {}]   ;;  %s646_s1 = inlined_call_operand.vmem [shape: f32[1,8], index: 1, kind: input, shape index: {}]   ;;  %s647_s2 = inlined_call_operand.vmem [shape: f32[1,8], index: 2, kind: input, shape index: {}]   ;;  %s648_s3 = inlined_call_operand.vmem [shape: f32[512,8], index: 3, kind: output, shape index: {}]  }
   0x1 LB: > { %s405_s13 = sadd.s32 4294967295, %s432_s12   ;;  %p409_p0 = scmp.ge.s32.totalorder %s432_s12, 1  ;;  %s432_s12 = sphi %s454_s12, %s13_s12  }
   0x2   : > { %p138_p1 = scmp.lt.s32.totalorder %s432_s12, 3 }
   0x4   : > { %p139_p2 = pnand %p409_p0, %p138_p1 }
   0x5   : > { %s410_s14 = sshll.u32 (!%p139_p2), %s405_s13, 5  ;;  %v465_v0 = vld [vmem:[%s646_s1] ss:$0 sm:$0xff] (!%p139_p2)  ;;  %vm316_vm0 = vcmask (!%p139_p2), 64512  }
   0x6   : > { %142 = sbr.rel (%p139_p2) target bundleno = 46 (0x2e), region = 32  ;;  %p163_p3 = scmp.lt.s32.totalorder (!%p139_p2), %s410_s14, 63  ;;  %v475_v1 = vld [vmem:[%s647_s2] ss:$0 sm:$0xff] (!%p139_p2) }
   0xd   : > { %s650_s14 = smov (!%p163_p3, %s410_s14), 63 }
   0xe   : > { %s411_s15 = sshll.u32 %s650_s14, 3 }
   0xf   : > { %s470_s20 = scalar_lea.vmem %s645_s0, %s411_s15  ;;  %s498_s25 = scalar_lea.vmem %s648_s3, %s411_s15 }
  0x10   : > { %v174_v2 = vld [vmem:[%s470_s20] sm:$0xff]  ;;  %v175_v3 = vld [vmem:[%s470_s20 + $0x8] sm:$0xff]  ;;  %v176_v4 = vld [vmem:[%s470_s20 + $0x10] sm:$0xff] }
  0x11   : > { %v213_v5 = vmul.f32 %v465_v0, %v174_v2  ;;  %v214_v6 = vmul.f32 %v465_v0, %v175_v3  ;;  %v215_v7 = vmul.f32 %v465_v0, %v176_v4  ;;  %v177_v8 = vld [vmem:[%s470_s20 + $0x18] sm:$0xff]  ;;  %v178_v9 = vld [vmem:[%s470_s20 + $0x20] sm:$0xff]  ;;  %v179_v10 = vld [vmem:[%s470_s20 + $0x28] sm:$0xff] }
  0x12   : > { %v216_v11 = vmul.f32 %v465_v0, %v177_v8  ;;  %v217_v12 = vmul.f32 %v465_v0, %v178_v9  ;;  %v218_v13 = vmul.f32 %v465_v0, %v179_v10  ;;  %v180_v14 = vld [vmem:[%s470_s20 + $0x30] sm:$0xff]  ;;  %v181_v15 = vld [vmem:[%s470_s20 + $0x38] sm:$0xff]  ;;  %v182_v24 = vld [vmem:[%s470_s20 + $0x40] sm:$0xff] }
  0x13   : > { %v252_v16 = vadd.f32 %v475_v1, %v213_v5  ;;  %v253_v17 = vadd.f32 %v475_v1, %v214_v6  ;;  %v254_v18 = vadd.f32 %v475_v1, %v215_v7  ;;  %v219_v19 = vmul.f32 %v465_v0, %v180_v14  ;;  %v183_v25 = vld [vmem:[%s470_s20 + $0x48] sm:$0xff]  ;;  %v184_v26 = vld [vmem:[%s470_s20 + $0x50] sm:$0xff]  ;;  %v185_v31 = vld [vmem:[%s470_s20 + $0x58] sm:$0xff] }
  0x14   : > { %v255_v20 = vadd.f32 %v475_v1, %v216_v11  ;;  %v256_v21 = vadd.f32 %v475_v1, %v217_v12  ;;  %v257_v22 = vadd.f32 %v475_v1, %v218_v13  ;;  %v220_v23 = vmul.f32 %v465_v0, %v181_v15  ;;  %v186_v32 = vld [vmem:[%s470_s20 + $0x60] sm:$0xff]  ;;  %v187_v33 = vld [vmem:[%s470_s20 + $0x68] sm:$0xff]  ;;  %v188_v38 = vld [vmem:[%s470_s20 + $0x70] sm:$0xff] }
  0x15   : > { %v284_v27 = vmax.f32 %v252_v16, 0.0  ;;  %v285_v28 = vmax.f32 %v253_v17, 0.0  ;;  %v286_v29 = vmax.f32 %v254_v18, 0.0  ;;  %v258_v30 = vadd.f32 %v475_v1, %v219_v19  ;;  %v189_v43 = vld [vmem:[%s470_s20 + $0x78] sm:$0xff]  ;;  %v190_v56 = vld [vmem:[%s470_s20 + $0x80] sm:$0xff]  ;;  %v191_v57 = vld [vmem:[%s470_s20 + $0x88] sm:$0xff] }
  0x16   : > { %v287_v34 = vmax.f32 %v255_v20, 0.0  ;;  %v288_v35 = vmax.f32 %v256_v21, 0.0  ;;  %v289_v36 = vmax.f32 %v257_v22, 0.0  ;;  %v259_v37 = vadd.f32 %v475_v1, %v220_v23  ;;  %v192_v58 = vld [vmem:[%s470_s20 + $0x90] sm:$0xff]  ;;  %v193_v63 = vld [vmem:[%s470_s20 + $0x98] sm:$0xff]  ;;  %v194_v2 = vld [vmem:[%s470_s20 + $0xa0] sm:$0xff] }
  0x17   : > { %317 = vst.msk [vmem:[%s498_s25] sm:$0xff] %vm316_vm0, %v284_v27  ;;  %318 = vst.msk [vmem:[%s498_s25 + $0x8] sm:$0xff] %vm316_vm0, %v285_v28  ;;  %v290_v39 = vmax.f32 %v258_v30, 0.0  ;;  %v221_v40 = vmul.f32 %v465_v0, %v182_v24  ;;  %v222_v41 = vmul.f32 %v465_v0, %v183_v25  ;;  %v223_v42 = vmul.f32 %v465_v0, %v184_v26  ;;  %v195_v3 = vld [vmem:[%s470_s20 + $0xa8] sm:$0xff]  ;;  %v196_v8 = vld [vmem:[%s470_s20 + $0xb0] sm:$0xff] }
  0x18   : > { %319 = vst.msk [vmem:[%s498_s25 + $0x10] sm:$0xff] %vm316_vm0, %v286_v29  ;;  %320 = vst.msk [vmem:[%s498_s25 + $0x18] sm:$0xff] %vm316_vm0, %v287_v34  ;;  %v291_v44 = vmax.f32 %v259_v37, 0.0  ;;  %v224_v45 = vmul.f32 %v465_v0, %v185_v31  ;;  %v225_v46 = vmul.f32 %v465_v0, %v186_v32  ;;  %v226_v47 = vmul.f32 %v465_v0, %v187_v33  ;;  %v197_v13 = vld [vmem:[%s470_s20 + $0xb8] sm:$0xff]  ;;  %v198_v26 = vld [vmem:[%s470_s20 + $0xc0] sm:$0xff] }
  0x19   : > { %321 = vst.msk [vmem:[%s498_s25 + $0x20] sm:$0xff] %vm316_vm0, %v288_v35  ;;  %322 = vst.msk [vmem:[%s498_s25 + $0x28] sm:$0xff] %vm316_vm0, %v289_v36  ;;  %v260_v48 = vadd.f32 %v475_v1, %v221_v40  ;;  %v261_v49 = vadd.f32 %v475_v1, %v222_v41  ;;  %v262_v50 = vadd.f32 %v475_v1, %v223_v42  ;;  %v199_v27 = vld [vmem:[%s470_s20 + $0xc8] sm:$0xff]  ;;  %v200_v28 = vld [vmem:[%s470_s20 + $0xd0] sm:$0xff] }
  0x1a   : > { %323 = vst.msk [vmem:[%s498_s25 + $0x30] sm:$0xff] %vm316_vm0, %v290_v39  ;;  %v227_v51 = vmul.f32 %v465_v0, %v188_v38  ;;  %324 = vst.msk [vmem:[%s498_s25 + $0x38] sm:$0xff] %vm316_vm0, %v291_v44  ;;  %v263_v52 = vadd.f32 %v475_v1, %v224_v45  ;;  %v264_v53 = vadd.f32 %v475_v1, %v225_v46  ;;  %v201_v33 = vld [vmem:[%s470_s20 + $0xd8] sm:$0xff]  ;;  %v202_v34 = vld [vmem:[%s470_s20 + $0xe0] sm:$0xff] }
  0x1b   : > { %v265_v54 = vadd.f32 %v475_v1, %v226_v47  ;;  %v228_v55 = vmul.f32 %v465_v0, %v189_v43  ;;  %v292_v59 = vmax.f32 %v260_v48, 0.0  ;;  %v293_v60 = vmax.f32 %v261_v49, 0.0  ;;  %v203_v35 = vld [vmem:[%s470_s20 + $0xe8] sm:$0xff]  ;;  %v204_v40 = vld [vmem:[%s470_s20 + $0xf0] sm:$0xff]  ;;  %v205_v45 = vld [vmem:[%s470_s20 + $0xf8] sm:$0xff] }
  0x1c   : > { %v294_v61 = vmax.f32 %v262_v50, 0.0  ;;  %v266_v62 = vadd.f32 %v475_v1, %v227_v51  ;;  %v295_v4 = vmax.f32 %v263_v52, 0.0  ;;  %v296_v5 = vmax.f32 %v264_v53, 0.0 }
  0x1d   : > { %v297_v6 = vmax.f32 %v265_v54, 0.0  ;;  %v267_v7 = vadd.f32 %v475_v1, %v228_v55  ;;  %325 = vst.msk [vmem:[%s498_s25 + $0x40] sm:$0xff] %vm316_vm0, %v292_v59  ;;  %326 = vst.msk [vmem:[%s498_s25 + $0x48] sm:$0xff] %vm316_vm0, %v293_v60  ;;  %v229_v10 = vmul.f32 %v465_v0, %v190_v56  ;;  %v230_v11 = vmul.f32 %v465_v0, %v191_v57 }
  0x1e   : > { %327 = vst.msk [vmem:[%s498_s25 + $0x50] sm:$0xff] %vm316_vm0, %v294_v61  ;;  %v298_v9 = vmax.f32 %v266_v62, 0.0  ;;  %v231_v12 = vmul.f32 %v465_v0, %v192_v58  ;;  %328 = vst.msk [vmem:[%s498_s25 + $0x58] sm:$0xff] %vm316_vm0, %v295_v4  ;;  %v232_v15 = vmul.f32 %v465_v0, %v193_v63  ;;  %v233_v16 = vmul.f32 %v465_v0, %v194_v2 }
  0x1f   : > { %329 = vst.msk [vmem:[%s498_s25 + $0x60] sm:$0xff] %vm316_vm0, %v296_v5  ;;  %330 = vst.msk [vmem:[%s498_s25 + $0x68] sm:$0xff] %vm316_vm0, %v297_v6  ;;  %v299_v14 = vmax.f32 %v267_v7, 0.0  ;;  %v234_v17 = vmul.f32 %v465_v0, %v195_v3  ;;  %v268_v18 = vadd.f32 %v475_v1, %v229_v10  ;;  %v269_v19 = vadd.f32 %v475_v1, %v230_v11 }
  0x20   : > { %331 = vst.msk [vmem:[%s498_s25 + $0x70] sm:$0xff] %vm316_vm0, %v298_v9  ;;  %v270_v20 = vadd.f32 %v475_v1, %v231_v12  ;;  %v235_v21 = vmul.f32 %v465_v0, %v196_v8  ;;  %v271_v22 = vadd.f32 %v475_v1, %v232_v15  ;;  %v272_v23 = vadd.f32 %v475_v1, %v233_v16 }
  0x21   : > { %332 = vst.msk [vmem:[%s498_s25 + $0x78] sm:$0xff] %vm316_vm0, %v299_v14  ;;  %v273_v24 = vadd.f32 %v475_v1, %v234_v17  ;;  %v236_v25 = vmul.f32 %v465_v0, %v197_v13  ;;  %v300_v29 = vmax.f32 %v268_v18, 0.0  ;;  %v301_v30 = vmax.f32 %v269_v19, 0.0 }
  0x22   : > { %v302_v31 = vmax.f32 %v270_v20, 0.0  ;;  %v274_v32 = vadd.f32 %v475_v1, %v235_v21  ;;  %v303_v36 = vmax.f32 %v271_v22, 0.0  ;;  %v304_v37 = vmax.f32 %v272_v23, 0.0 }
  0x23   : > { %v305_v38 = vmax.f32 %v273_v24, 0.0  ;;  %v275_v39 = vadd.f32 %v475_v1, %v236_v25  ;;  %333 = vst.msk [vmem:[%s498_s25 + $0x80] sm:$0xff] %vm316_vm0, %v300_v29  ;;  %334 = vst.msk [vmem:[%s498_s25 + $0x88] sm:$0xff] %vm316_vm0, %v301_v30  ;;  %v237_v42 = vmul.f32 %v465_v0, %v198_v26  ;;  %v238_v43 = vmul.f32 %v465_v0, %v199_v27 }
  0x24   : > { %335 = vst.msk [vmem:[%s498_s25 + $0x90] sm:$0xff] %vm316_vm0, %v302_v31  ;;  %v306_v41 = vmax.f32 %v274_v32, 0.0  ;;  %v239_v44 = vmul.f32 %v465_v0, %v200_v28  ;;  %336 = vst.msk [vmem:[%s498_s25 + $0x98] sm:$0xff] %vm316_vm0, %v303_v36  ;;  %v240_v47 = vmul.f32 %v465_v0, %v201_v33  ;;  %v241_v48 = vmul.f32 %v465_v0, %v202_v34 }
  0x25   : > { %337 = vst.msk [vmem:[%s498_s25 + $0xa0] sm:$0xff] %vm316_vm0, %v304_v37  ;;  %338 = vst.msk [vmem:[%s498_s25 + $0xa8] sm:$0xff] %vm316_vm0, %v305_v38  ;;  %v307_v46 = vmax.f32 %v275_v39, 0.0  ;;  %v242_v49 = vmul.f32 %v465_v0, %v203_v35  ;;  %v276_v50 = vadd.f32 %v475_v1, %v237_v42  ;;  %v277_v51 = vadd.f32 %v475_v1, %v238_v43 }
  0x26   : > { %339 = vst.msk [vmem:[%s498_s25 + $0xb0] sm:$0xff] %vm316_vm0, %v306_v41  ;;  %v278_v52 = vadd.f32 %v475_v1, %v239_v44  ;;  %v243_v53 = vmul.f32 %v465_v0, %v204_v40  ;;  %v279_v54 = vadd.f32 %v475_v1, %v240_v47  ;;  %v280_v55 = vadd.f32 %v475_v1, %v241_v48 }
  0x27   : > { %340 = vst.msk [vmem:[%s498_s25 + $0xb8] sm:$0xff] %vm316_vm0, %v307_v46  ;;  %v281_v56 = vadd.f32 %v475_v1, %v242_v49  ;;  %v244_v57 = vmul.f32 %v465_v0, %v205_v45  ;;  %v308_v58 = vmax.f32 %v276_v50, 0.0  ;;  %v309_v59 = vmax.f32 %v277_v51, 0.0 }
  0x28   : > { %v310_v60 = vmax.f32 %v278_v52, 0.0  ;;  %v282_v61 = vadd.f32 %v475_v1, %v243_v53  ;;  %v311_v62 = vmax.f32 %v279_v54, 0.0  ;;  %v312_v63 = vmax.f32 %v280_v55, 0.0 }
  0x29   : > { %v313_v2 = vmax.f32 %v281_v56, 0.0  ;;  %v283_v3 = vadd.f32 %v475_v1, %v244_v57  ;;  %341 = vst.msk [vmem:[%s498_s25 + $0xc0] sm:$0xff] %vm316_vm0, %v308_v58  ;;  %342 = vst.msk [vmem:[%s498_s25 + $0xc8] sm:$0xff] %vm316_vm0, %v309_v59 }
  0x2a   : > { %343 = vst.msk [vmem:[%s498_s25 + $0xd0] sm:$0xff] %vm316_vm0, %v310_v60  ;;  %v314_v4 = vmax.f32 %v282_v61, 0.0  ;;  %344 = vst.msk [vmem:[%s498_s25 + $0xd8] sm:$0xff] %vm316_vm0, %v311_v62 }
  0x2b   : > { %345 = vst.msk [vmem:[%s498_s25 + $0xe0] sm:$0xff] %vm316_vm0, %v312_v63  ;;  %346 = vst.msk [vmem:[%s498_s25 + $0xe8] sm:$0xff] %vm316_vm0, %v313_v2  ;;  %v315_v0 = vmax.f32 %v283_v3, 0.0 }
  0x2c   : > { %347 = vst.msk [vmem:[%s498_s25 + $0xf0] sm:$0xff] %vm316_vm0, %v314_v4 }
  0x2d   : > { %348 = vst.msk [vmem:[%s498_s25 + $0xf8] sm:$0xff] %vm316_vm0, %v315_v0 }
  0x2e PF: > { %s13_s12 = sadd.s32 1, %s432_s12  }
  0x2f   : > { %p10_p4 = scmp.ge.s32.totalorder %s13_s12, 4  }
  0x31   :  { %12 = sbr.rel (!%p10_p4) target bundleno = 1 (0x1), region = 62 }

</bundles_post_ra>
